<compile_context>
chip_gen: v5e
topology: v5e:2x2
jax: 0.10.0
libtpu: 0.0.40
codegen_flags: <defaults>
</compile_context>

<pallas_src>
import functools

import jax
import jax.numpy as jnp
from jax.experimental import pallas as pl
from jax.experimental.pallas import tpu as pltpu


def _dice_kernel(pred_ref, tgt_ref, out_ref, acc_p, acc_g, acc_pg, *, num_class):
    # pred_ref: (1, C-1, T)  pred channels 1..C-1, caller dtype (f32 or bf16)
    # tgt_ref : (1, 1, T)    int32 class labels (padding = 0 = background)
    # out_ref : (1, 1, 128)  f32 per-batch dice (broadcast across lanes)
    # acc_*   : (C-1, T)     f32 running elementwise accumulators
    s = pl.program_id(1)

    @pl.when(s == 0)
    def _():
        acc_p[...] = jnp.zeros_like(acc_p)
        acc_g[...] = jnp.zeros_like(acc_g)
        acc_pg[...] = jnp.zeros_like(acc_pg)

    p = pred_ref[0].astype(jnp.float32)                          # (C-1, T)
    tgt = tgt_ref[0]                                             # (1, T) int32
    organ = jax.lax.broadcasted_iota(jnp.int32, p.shape, 0) + 1  # row c -> class c+1
    g = (tgt == organ).astype(jnp.float32)                       # one-hot rows

    acc_p[...] += p
    acc_g[...] += g
    acc_pg[...] += p * g

    @pl.when(s == pl.num_programs(1) - 1)
    def _():
        s_p = jnp.sum(acc_p[...], axis=-1, keepdims=True)        # (C-1, 1)
        s_g = jnp.sum(acc_g[...], axis=-1, keepdims=True)
        s_pg = jnp.sum(acc_pg[...], axis=-1, keepdims=True)
        # mul_PG = s_g - s_pg ; mulP_G = s_p - s_pg
        dice_c = (s_pg + 1.0) / (s_pg + 0.8 * (s_g - s_pg)
                                 + 0.2 * (s_p - s_pg) + 1.0)
        dice = jnp.sum(dice_c) / (num_class - 1)
        out_ref[...] = jnp.broadcast_to(dice, out_ref.shape).astype(out_ref.dtype)


def dice_loss(pred, target, num_class=3, *, max_tile=8192):
    """1 - mean over batch of per-sample dice (matches DiceLoss.forward)."""
    B, C, H, W = pred.shape
    assert C == num_class and num_class >= 2
    HW = H * W

    # Drop the unused background channel, flatten spatial dims (lane-dense).
    pred_fg = pred[:, 1:, :, :].reshape(B, C - 1, HW)
    tgt = target.reshape(B, 1, HW).astype(jnp.int32)

    # Spatial tile: multiple of 128, capped so double-buffered blocks plus
    # accumulators stay small in VMEM on every TPU generation.
    T = min(max_tile, pl.cdiv(HW, 128) * 128)
    HW_pad = pl.cdiv(HW, T) * T
    if HW_pad != HW:
        pad = HW_pad - HW
        # zero padding: pred=0 and target=0 (background) contribute nothing
        # to sum(P), sum(G) or sum(P*G) for organ classes >= 1.
        pred_fg = jnp.pad(pred_fg, ((0, 0), (0, 0), (0, pad)))
        tgt = jnp.pad(tgt, ((0, 0), (0, 0), (0, pad)))
    n_t = HW_pad // T

    kernel = functools.partial(_dice_kernel, num_class=num_class)
    per_batch = pl.pallas_call(
        kernel,
        out_shape=jax.ShapeDtypeStruct((B, 1, 128), jnp.float32),
        grid_spec=pltpu.PrefetchScalarGridSpec(
            num_scalar_prefetch=0,
            grid=(B, n_t),
            in_specs=[
                pl.BlockSpec((1, C - 1, T), lambda b, s: (b, 0, s)),
                pl.BlockSpec((1, 1, T), lambda b, s: (b, 0, s)),
            ],
            out_specs=pl.BlockSpec((1, 1, 128), lambda b, s: (b, 0, 0)),
            scratch_shapes=[
                pltpu.VMEM((C - 1, T), jnp.float32),   # sum(P)  accumulator
                pltpu.VMEM((C - 1, T), jnp.float32),   # sum(G)  accumulator
                pltpu.VMEM((C - 1, T), jnp.float32),   # sum(PG) accumulator
            ],
        ),
        compiler_params=pltpu.CompilerParams(
            dimension_semantics=("parallel", "arbitrary")),
    )(pred_fg, tgt)

    dice = per_batch[:, 0, 0]                                    # (B,)
    return 1.0 - jnp.mean(dice)


def dice_loss_ref(pred, target, num_class=3):
    """Pure-JAX reference mirroring the PyTorch code exactly."""
    pred = pred.astype(jnp.float32)
    organ_target = jax.nn.one_hot(target, num_class, axis=1,
                                  dtype=jnp.float32)             # (B, C, H, W)
    dice = 0.0
    for organ_index in range(1, num_class):
        P = pred[:, organ_index]
        _P = 1.0 - P
        G = organ_target[:, organ_index]
        _G = 1.0 - G
        mulPG = (P * G).sum(axis=(1, 2))
        mul_PG = (_P * G).sum(axis=(1, 2))
        mulP_G = (P * _G).sum(axis=(1, 2))
        dice = dice + (mulPG + 1.0) / (mulPG + 0.8 * mul_PG + 0.2 * mulP_G + 1.0)
    dice = dice / (num_class - 1)
    return 1.0 - dice.mean()


if __name__ == "__main__":
    num_class = 3
    key = jax.random.PRNGKey(0)
    k1, k2, k3, k4 = jax.random.split(key, 4)

    # --- small test (single spatial tile) ------------------------------------
    B, H, W = 2, 16, 16
    logits = jax.random.normal(k1, (B, num_class, H, W), dtype=jnp.float32)
    pred = jax.nn.softmax(logits, axis=1)
    target = jax.random.randint(k2, (B, H, W), 0, num_class, dtype=jnp.int32)

    loss = jax.block_until_ready(dice_loss(pred, target, num_class=num_class))
    ref = dice_loss_ref(pred, target, num_class=num_class)
    assert jnp.allclose(loss, ref, rtol=1e-4, atol=1e-4), (loss, ref)

    # bfloat16 pred path (no forced f32 in the wrapper; halves pred HBM bytes)
    loss_bf16 = jax.block_until_ready(
        dice_loss(pred.astype(jnp.bfloat16), target, num_class=num_class))
    assert jnp.isfinite(loss_bf16)
    assert jnp.allclose(loss_bf16, ref, atol=5e-2), (loss_bf16, ref)

    # --- larger, non-aligned test (multiple spatial tiles + zero padding) ----
    B2, H2, W2 = 2, 96, 96          # H*W = 9216 > 8192 -> 2 spatial tiles
    logits2 = jax.random.normal(k3, (B2, num_class, H2, W2), dtype=jnp.float32)
    pred2 = jax.nn.softmax(logits2, axis=1)
    target2 = jax.random.randint(k4, (B2, H2, W2), 0, num_class, dtype=jnp.int32)

    loss2 = jax.block_until_ready(dice_loss(pred2, target2, num_class=num_class))
    ref2 = dice_loss_ref(pred2, target2, num_class=num_class)
    assert jnp.allclose(loss2, ref2, rtol=1e-4, atol=1e-4), (loss2, ref2)

    print("KERNEL_OK")
</pallas_src>

<mosaic_0001>
module attributes {stable_mosaic.version = 11 : i64} {
  func.func @_dice_kernel(%arg0: i32, %arg1: i32, %arg2: memref<1x2x256xf32, #tpu.memory_space<vmem>>, %arg3: memref<1x1x256xi32, #tpu.memory_space<vmem>>, %arg4: memref<1x1x128xf32, #tpu.memory_space<vmem>>, %arg5: memref<2x256xf32, #tpu.memory_space<vmem>>, %arg6: memref<2x256xf32, #tpu.memory_space<vmem>>, %arg7: memref<2x256xf32, #tpu.memory_space<vmem>>) attributes {dimension_semantics = [#tpu.dimension_semantics<parallel>, #tpu.dimension_semantics<arbitrary>], iteration_bounds = array<i64: 2, 1>, scalar_prefetch = 0 : i64, scratch_operands = 3 : i64, tpu.core_type = #tpu.core_type<tc>, window_params = [{transform_indices = @transform_0, window_bounds = array<i64: 1, 2, 256>}, {transform_indices = @transform_1, window_bounds = array<i64: 1, 1, 256>}, {transform_indices = @transform_2, window_bounds = array<i64: 1, 1, 128>}]} {
    %c0_i32 = arith.constant 0 : i32
    %0 = arith.cmpi eq, %arg1, %c0_i32 : i32
    %1 = arith.extui %0 : i1 to i32
    %c0_i32_0 = arith.constant 0 : i32
    %2 = arith.cmpi ne, %1, %c0_i32_0 : i32
    scf.if %2 {
      %cst = arith.constant 0.000000e+00 : f32
      %27 = vector.broadcast %cst : f32 to vector<2x256xf32>
      %c0_20 = arith.constant 0 : index
      %c0_21 = arith.constant 0 : index
      %28 = vector.load %arg5[%c0_20, %c0_21] : memref<2x256xf32, #tpu.memory_space<vmem>>, vector<2x256xf32>
      tpu.vector_store %arg5[%c0_20, %c0_21], %27 {strides = array<i32>} : memref<2x256xf32, #tpu.memory_space<vmem>>, vector<2x256xf32>,
      %cst_22 = arith.constant 0.000000e+00 : f32
      %29 = vector.broadcast %cst_22 : f32 to vector<2x256xf32>
      %c0_23 = arith.constant 0 : index
      %c0_24 = arith.constant 0 : index
      %30 = vector.load %arg6[%c0_23, %c0_24] : memref<2x256xf32, #tpu.memory_space<vmem>>, vector<2x256xf32>
      tpu.vector_store %arg6[%c0_23, %c0_24], %29 {strides = array<i32>} : memref<2x256xf32, #tpu.memory_space<vmem>>, vector<2x256xf32>,
      %cst_25 = arith.constant 0.000000e+00 : f32
      %31 = vector.broadcast %cst_25 : f32 to vector<2x256xf32>
      %c0_26 = arith.constant 0 : index
      %c0_27 = arith.constant 0 : index
      %32 = vector.load %arg7[%c0_26, %c0_27] : memref<2x256xf32, #tpu.memory_space<vmem>>, vector<2x256xf32>
      tpu.vector_store %arg7[%c0_26, %c0_27], %31 {strides = array<i32>} : memref<2x256xf32, #tpu.memory_space<vmem>>, vector<2x256xf32>,
    } else {
    }
    %c0 = arith.constant 0 : index
    %c0_1 = arith.constant 0 : index
    %c0_2 = arith.constant 0 : index
    %3 = vector.load %arg2[%c0, %c0_1, %c0_2] : memref<1x2x256xf32, #tpu.memory_space<vmem>>, vector<1x2x256xf32>
    %4 = vector.shape_cast %3 : vector<1x2x256xf32> to vector<2x256xf32>
    %c0_3 = arith.constant 0 : index
    %c0_4 = arith.constant 0 : index
    %c0_5 = arith.constant 0 : index
    %5 = vector.load %arg3[%c0_3, %c0_4, %c0_5] : memref<1x1x256xi32, #tpu.memory_space<vmem>>, vector<1x1x256xi32>
    %6 = vector.shape_cast %5 : vector<1x1x256xi32> to vector<1x256xi32>
    %7 = tpu.iota {dimensions = array<i32: 0>} : vector<2x256xi32>
    %c1_i32 = arith.constant 1 : i32
    %8 = vector.broadcast %c1_i32 : i32 to vector<2x256xi32>
    %9 = arith.addi %7, %8 : vector<2x256xi32>
    %10 = vector.broadcast %6 : vector<1x256xi32> to vector<2x256xi32>
    %11 = arith.cmpi eq, %10, %9 : vector<2x256xi32>
    %12 = arith.extui %11 : vector<2x256xi1> to vector<2x256xi32>
    %13 = arith.sitofp %12 : vector<2x256xi32> to vector<2x256xf32>
    %c0_6 = arith.constant 0 : index
    %c0_7 = arith.constant 0 : index
    %14 = vector.load %arg5[%c0_6, %c0_7] : memref<2x256xf32, #tpu.memory_space<vmem>>, vector<2x256xf32>
    %15 = arith.addf %14, %4 : vector<2x256xf32>
    %c0_8 = arith.constant 0 : index
    %c0_9 = arith.constant 0 : index
    %16 = vector.load %arg5[%c0_8, %c0_9] : memref<2x256xf32, #tpu.memory_space<vmem>>, vector<2x256xf32>
    tpu.vector_store %arg5[%c0_8, %c0_9], %15 {strides = array<i32>} : memref<2x256xf32, #tpu.memory_space<vmem>>, vector<2x256xf32>,
    %c0_10 = arith.constant 0 : index
    %c0_11 = arith.constant 0 : index
    %17 = vector.load %arg6[%c0_10, %c0_11] : memref<2x256xf32, #tpu.memory_space<vmem>>, vector<2x256xf32>
    %18 = arith.addf %17, %13 : vector<2x256xf32>
    %c0_12 = arith.constant 0 : index
    %c0_13 = arith.constant 0 : index
    %19 = vector.load %arg6[%c0_12, %c0_13] : memref<2x256xf32, #tpu.memory_space<vmem>>, vector<2x256xf32>
    tpu.vector_store %arg6[%c0_12, %c0_13], %18 {strides = array<i32>} : memref<2x256xf32, #tpu.memory_space<vmem>>, vector<2x256xf32>,
    %c0_14 = arith.constant 0 : index
    %c0_15 = arith.constant 0 : index
    %20 = vector.load %arg7[%c0_14, %c0_15] : memref<2x256xf32, #tpu.memory_space<vmem>>, vector<2x256xf32>
    %21 = arith.mulf %4, %13 : vector<2x256xf32>
    %22 = arith.addf %20, %21 : vector<2x256xf32>
    %c0_16 = arith.constant 0 : index
    %c0_17 = arith.constant 0 : index
    %23 = vector.load %arg7[%c0_16, %c0_17] : memref<2x256xf32, #tpu.memory_space<vmem>>, vector<2x256xf32>
    tpu.vector_store %arg7[%c0_16, %c0_17], %22 {strides = array<i32>} : memref<2x256xf32, #tpu.memory_space<vmem>>, vector<2x256xf32>,
    %c0_i32_18 = arith.constant 0 : i32
    %24 = arith.cmpi eq, %arg1, %c0_i32_18 : i32
    %25 = arith.extui %24 : i1 to i32
    %c0_i32_19 = arith.constant 0 : i32
    %26 = arith.cmpi ne, %25, %c0_i32_19 : i32
    scf.if %26 {
      %c0_20 = arith.constant 0 : index
      %c0_21 = arith.constant 0 : index
      %27 = vector.load %arg5[%c0_20, %c0_21] : memref<2x256xf32, #tpu.memory_space<vmem>>, vector<2x256xf32>
      %cst = arith.constant dense<0.000000e+00> : vector<2xf32>
      %28 = vector.multi_reduction <add>, %27, %cst [1] : vector<2x256xf32> to vector<2xf32>
      %29 = vector.shape_cast %28 : vector<2xf32> to vector<2x1xf32>
      %c0_22 = arith.constant 0 : index
      %c0_23 = arith.constant 0 : index
      %30 = vector.load %arg6[%c0_22, %c0_23] : memref<2x256xf32, #tpu.memory_space<vmem>>, vector<2x256xf32>
      %cst_24 = arith.constant dense<0.000000e+00> : vector<2xf32>
      %31 = vector.multi_reduction <add>, %30, %cst_24 [1] : vector<2x256xf32> to vector<2xf32>
      %32 = vector.shape_cast %31 : vector<2xf32> to vector<2x1xf32>
      %c0_25 = arith.constant 0 : index
      %c0_26 = arith.constant 0 : index
      %33 = vector.load %arg7[%c0_25, %c0_26] : memref<2x256xf32, #tpu.memory_space<vmem>>, vector<2x256xf32>
      %cst_27 = arith.constant dense<0.000000e+00> : vector<2xf32>
      %34 = vector.multi_reduction <add>, %33, %cst_27 [1] : vector<2x256xf32> to vector<2xf32>
      %35 = vector.shape_cast %34 : vector<2xf32> to vector<2x1xf32>
      %cst_28 = arith.constant 1.000000e+00 : f32
      %36 = vector.broadcast %cst_28 : f32 to vector<2x1xf32>
      %37 = arith.addf %35, %36 : vector<2x1xf32>
      %38 = arith.subf %32, %35 : vector<2x1xf32>
      %cst_29 = arith.constant 8.000000e-01 : f32
      %39 = vector.broadcast %cst_29 : f32 to vector<2x1xf32>
      %40 = arith.mulf %39, %38 : vector<2x1xf32>
      %41 = arith.addf %35, %40 : vector<2x1xf32>
      %42 = arith.subf %29, %35 : vector<2x1xf32>
      %cst_30 = arith.constant 2.000000e-01 : f32
      %43 = vector.broadcast %cst_30 : f32 to vector<2x1xf32>
      %44 = arith.mulf %43, %42 : vector<2x1xf32>
      %45 = arith.addf %41, %44 : vector<2x1xf32>
      %cst_31 = arith.constant 1.000000e+00 : f32
      %46 = vector.broadcast %cst_31 : f32 to vector<2x1xf32>
      %47 = arith.addf %45, %46 : vector<2x1xf32>
      %48 = arith.divf %37, %47 : vector<2x1xf32>
      %49 = vector.shape_cast %48 : vector<2x1xf32> to vector<1x2x1xf32>
      %cst_32 = arith.constant dense<0.000000e+00> : vector<1xf32>
      %50 = vector.multi_reduction <add>, %49, %cst_32 [1, 2] : vector<1x2x1xf32> to vector<1xf32>
      %51 = vector.shape_cast %50 : vector<1xf32> to vector<1x1x1xf32>
      %52 = vector.extract %51[0, 0, 0] : f32 from vector<1x1x1xf32>
      %cst_33 = arith.constant 2.000000e+00 : f32
      %53 = arith.divf %52, %cst_33 : f32
      %54 = vector.broadcast %53 : f32 to vector<1x1x128xf32>
      %c0_34 = arith.constant 0 : index
      %c0_35 = arith.constant 0 : index
      %c0_36 = arith.constant 0 : index
      %55 = vector.load %arg4[%c0_34, %c0_35, %c0_36] : memref<1x1x128xf32, #tpu.memory_space<vmem>>, vector<1x1x128xf32>
      tpu.vector_store %arg4[%c0_34, %c0_35, %c0_36], %54 {strides = array<i32>} : memref<1x1x128xf32, #tpu.memory_space<vmem>>, vector<1x1x128xf32>,
    } else {
    }
    return
  }
  func.func @transform_0(%arg0: i32, %arg1: i32) -> (i32, i32, i32) {
    %c0_i32 = arith.constant 0 : i32
    %c0_i32_0 = arith.constant 0 : i32
    return %arg0, %c0_i32, %arg1 : i32, i32, i32
  }
  func.func @transform_1(%arg0: i32, %arg1: i32) -> (i32, i32, i32) {
    %c0_i32 = arith.constant 0 : i32
    %c0_i32_0 = arith.constant 0 : i32
    return %arg0, %c0_i32, %arg1 : i32, i32, i32
  }
  func.func @transform_2(%arg0: i32, %arg1: i32) -> (i32, i32, i32) {
    %c0_i32 = arith.constant 0 : i32
    %c0_i32_0 = arith.constant 0 : i32
    %c0_i32_1 = arith.constant 0 : i32
    return %arg0, %c0_i32, %c0_i32_0 : i32, i32, i32
  }
}

</mosaic_0001>

<bundles_post_ra>
// kernel: tpu_custom_call.1
= control target key start
LH: loop header
LB: loop body
LE: loop exit
PB: predicated region body
PF: predicated region fallthrough
CT: control target
= control target key end

     0   :  { %7 = vsyncpa [#allocation6], 0  ;;  %s862_s0 = inlined_call_operand.hbm [shape: f32[2,2,256], index: 0, kind: input, shape index: {}]   ;;  %s863_s1 = inlined_call_operand.hbm [shape: s32[2,1,256], index: 1, kind: input, shape index: {}]   ;;  %s864_s2 = inlined_call_operand.hbm [shape: f32[2,1,128], index: 2, kind: output, shape index: {}]  }
   0x1   :  { %9 = vsyncpa [#allocation6 + $0x1], 0 }
   0x2   :  { %10 = vsyncpa [#allocation9], 0 }
   0x3   :  { %12 = vsyncpa [#allocation9 + $0x1], 0 }
   0x4   :  { %13 = vsyncpa [#allocation7], 0 }
   0x5   :  { %15 = vsyncpa [#allocation7 + $0x1], 0  ;;  %s716_s9 = smov 0   ;;  %s718_s10 = smov 0  }
   0x6   :  { %s720_s11 = smov 0   ;;  %s722_s12 = smov 0  }
   0x7   :  { %s724_s13 = smov 0   ;;  %s726_s14 = smov 0  }
   0x8 LB: > { %s457_s15 = sadd.s32 4294967295, %s697_s14   ;;  %s458_s16 = sadd.s32 4294967294, %s697_s14   ;;  %s697_s14 = sphi %s726_s14, %s21_s14   ;;  %s693_s13 = sphi %s724_s13, %s874_s13   ;;  %s689_s12 = sphi %s722_s12, %s873_s12   ;;  %s685_s11 = sphi %s720_s11, %s872_s11   ;;  %s681_s10 = sphi %s718_s10, %s871_s10   ;;  %s677_s9 = sphi %s716_s9, %s870_s9  }
   0x9   : > { %s33_s17 = sadd.s32 1, %s693_s13  ;;  %s42_s18 = sadd.s32 1, %s685_s11 }
   0xa   : > { %p35_p0 = scmp.ge.s32.totalorder %s33_s17, 2  ;;  %p49_p1 = scmp.ne.s32.totalorder %s685_s11, %s681_s10 }
   0xb   : > { %p50_p2 = scmp.eq.s32.totalorder %s697_s14, 0  ;;  %p55_p3 = scmp.ne.s32.totalorder %s681_s10, %s677_s9 }
   0xc   : > { %s876_s17 = smov (%p35_p0, %s33_s17), 0  ;;  %p56_p5 = scmp.eq.s32.totalorder %s457_s15, 0 }
   0xd   : > { %p757_p4 = por %p50_p2, %p49_p1  ;;  %s37_s20 = ssub.s32 %s693_s13, %s876_s17 }
   0xe   : > { %p107_p6 = scmp.eq.s32.totalorder %s457_s15, 1  ;;  %p40_p7 = scmp.eq.s32.totalorder %s37_s20, 0 }
   0xf   : > { %p763_p8 = por %p56_p5, %p55_p3  ;;  %p113_p10 = scmp.eq.s32.totalorder %s458_s16, 1 }
  0x10   : > { %p767_p9 = por %p107_p6, %p49_p1  ;;  %p460_p12 = scmp.ge.s32.totalorder %s697_s14, 2 }
  0x11   : > { %s772_s23 = scalar_select %p40_p7, %s685_s11, %s42_s18  }
  0x12   : > { %p774_p11 = por %p113_p10, %p55_p3  ;;  %p495_p13 = scmp.lt.s32.totalorder %s697_s14, 2 }
  0x13   : > { %s133_s25 = sand.u32 1, %s685_s11   ;;  %s473_s27 = sshll.u32 %s693_s13, 2 }
  0x14   : > { %s461_s26 = sshll.u32 %s133_s25, 2  ;;  %s144_s30 = scalar_lea.hbm %s862_s0, %s473_s27 }
  0x15   : > { %s137_s3 = scalar_lea.vmem [#allocation5], %s461_s26  ;;  %s146_s5 = sshll.u32 %s144_s30, 4  ;;  %s147_s5 = int_to_ptr.hbm [resolvable:$true] %s146_s5 }
  0x16   : > { %s148_s4 = sshll.u32 %s137_s3, 4  ;;  %p787_p0 = pnand %p495_p13, %p757_p4  ;;  %s149_s4 = int_to_ptr.vmem [resolvable:$true] %s148_s4 }
  0x17   : > { %p466_p1 = scmp.ge.s32.totalorder %s697_s14, 1  ;;  %p174_p2 = scmp.lt.s32.totalorder %s697_s14, 3 }
  0x18   : > { %s134_s7 = scalar_lea.sflag [#allocation6], %s133_s25  ;;  %s464_s8 = sshll.u32 %s133_s25, 1 }
  0x19   : > { %487 = dma.hbm_to_vmem [thread:$0]  (!%p787_p0), %s147_s5, 64, %s149_s4, %s134_s7  }
  0x1a   : > { %p175_p3 = pnand %p466_p1, %p174_p2  ;;  %s465_s15 = sshll.u32 %s693_s13, 1 }
  0x1b   : > { %s165_s20 = scalar_lea.hbm %s863_s1, %s465_s15  ;;  %s159_s26 = scalar_lea.vmem [#allocation8], %s464_s8 }
  0x1c   : > { %s169_s19 = sshll.u32 %s159_s26, 4  ;;  %s167_s27 = sshll.u32 %s165_s20, 4  ;;  %s170_s19 = int_to_ptr.vmem [resolvable:$true] %s169_s19  ;;  %s168_s27 = int_to_ptr.hbm [resolvable:$true] %s167_s27 }
  0x1d   : > { %s156_s28 = scalar_lea.sflag [#allocation9], %s133_s25  ;;  %178 = sbr.rel (%p175_p3) target bundleno = 415 (0x19f), region = 28 }
  0x1e   : > { %490 = dma.hbm_to_vmem [thread:$0]  (!%p787_p0), %s168_s27, 32, %s170_s19, %s156_s28  }
  0x1f   : > { %s802_s29 = sand.u32 (!%p175_p3), 1, %s681_s10  }
  0x20   : > { %s467_s30 = sshll.u32 (!%p175_p3), %s802_s29, 2  ;;  %s181_s3 = scalar_lea.sflag (!%p175_p3), [#allocation6], %s802_s29 }
  0x21   : > { %s184_s4 = scalar_lea.vmem (!%p175_p3), [#allocation5], %s467_s30 }
  0x22   : > { %664 = dma.done.wait (%p763_p8), %s181_s3, 64  }
  0x23   : > { %666 = vsyncadd (%p763_p8), %s181_s3, 4294967232  ;;  %s468_s25 = sshll.u32 %s802_s29, 1  ;;  %s191_s5 = scalar_lea.sflag [#allocation9], %s802_s29 }
  0x24   : > { %s194_s6 = scalar_lea.vmem [#allocation8], %s468_s25 }
  0x25   : > { %668 = dma.done.wait (%p763_p8), %s191_s5, 32  }
  0x26   : > { %670 = vsyncadd (%p763_p8), %s191_s5, 4294967264  ;;  %v231_v0 = vlaneseq  ;;  %v699_v1 = vmov 0.0   ;;  %v229_v4 = vld [vmem:[%s184_s4] sm:$0xf]  ;;  %v230_v5 = vld [vmem:[%s194_s6] sm:$0x3]  ;;  %s351_s8 = scalar_lea.hbm %s864_s2, %s689_s12 }
  0x27   : > { %226 = vst [vmem:[#allocation2] sm:$0xf] %v699_v1  ;;  %v234_v6 = vperm.slane %v230_v5, 0  ;;  %v235_v7 = vperm.slane %v230_v5, 1  ;;  %vm249_vm2 = vcmask 1041408   ;;  %vm320_vm7 = vcmask 1024  }
  0x28   : > { %227 = vst [vmem:[#allocation3] sm:$0xf] %v699_v1  ;;  %v232_v2 = vshrl.u32 %v231_v0, 7  ;;  %v700_v60 = vmov 2.0   ;;  %s219_s15 = scalar_lea.vmem [#allocation10], %s802_s29  ;;  %s355_s20 = sshll.u32 %s351_s8, 4  ;;  %s356_s20 = int_to_ptr.hbm [resolvable:$true] %s355_s20 }
  0x29   : > { %228 = vst [vmem:[#allocation4] sm:$0xf] %v699_v1  ;;  %s353_s16 = sshll.u32 %s219_s15, 4  ;;  %s343_s27 = scalar_lea.sflag [#allocation7], %s802_s29  ;;  %s354_s16 = int_to_ptr.vmem [resolvable:$true] %s353_s16 }
  0x2a   : > { %v233_v3 = vadd.s32 1, %v232_v2  ;;  %s625_s28 = sshra.s32 %s356_s20, 4  ;;  %s631_s4 = scalar_lea.hbm %s864_s2, 2  ;;  %s626_s28 = int_to_ptr.hbm [resolvable:$true] %s625_s28 }
  0x2b   : > { %s627_s30 = scalar_lea.hbm %s626_s28, 1  ;;  %p632_p7 = scmp.lt.s32.totalorder %s626_s28, %s864_s2 }
  0x2c   : > { %vm236_vm0 = vcmp.eq.s32.totalorder %v234_v6, %v233_v3  ;;  %vm237_vm1 = vcmp.eq.s32.totalorder %v235_v7, %v233_v3  ;;  %p628_p4 = scmp.ne.s32.totalorder %s626_s28, %s627_s30  ;;  %p633_p8 = scmp.lt.s32.totalorder %s631_s4, %s627_s30 }
  0x2d   : > { %v469_v10 = vsel %vm236_vm0, 1.0, %v699_v1  ;;  %v470_v11 = vsel %vm237_vm1, 1.0, %v699_v1 }
  0x2e   : > { %v242_v8 = vld [vmem:[#allocation2] sm:$0xf]  ;;  %v248_v13 = vrot.slane %v470_v11, 6  ;;  %p629_p5 = pnand %p628_p4, %p767_p9  ;;  %p634_p10 = por %p633_p8, %p632_p7 }
  0x2f   : > { %v243_v9 = vadd.f32 %v242_v8, %v229_v4  ;;  %v245_v12 = vld [vmem:[#allocation3] sm:$0xf] }
  0x30   : > { %v250_v14 = vsel %vm249_vm2, %v469_v10, %v248_v13  ;;  %v254_v15 = vld [vmem:[#allocation4] sm:$0xf]  ;;  %p630_p6 = pneg %p629_p5 }
  0x31   : > { %244 = vst [vmem:[#allocation2] sm:$0xf] %v243_v9  ;;  %v252_v16 = vadd.f32 %v250_v14, %v245_v12  ;;  %v255_v17 = vmul.f32 %v250_v14, %v229_v4 }
  0x32   : > { %p635_p13 = pnand %p634_p10, %p630_p6 }
  0x33   : > { %253 = vst [vmem:[#allocation3] sm:$0xf] %v252_v16  ;;  %v256_v18 = vadd.f32 %v255_v17, %v254_v15 }
  0x35   : > { %257 = vst [vmem:[#allocation4] sm:$0xf] %v256_v18 }
  0x38   : > { %v261_v19 = vld [vmem:[#allocation2] sm:$0xf] }
  0x39   : > { %263 = vst [vmem:[#allocation1] ss:$4 sm:$0xff] %v261_v19 }
  0x3a   : > { %v273_v20 = vld [vmem:[#allocation3] sm:$0xf] }
  0x3c   : > { %v285_v26 = vld [vmem:[#allocation4] sm:$0xf] }
  0x40   : > { %v264_v21 = vld.sshfl [vmem:[#allocation1] sm:$0xff pattern:$0x73625140]  ;;  %v265_v22 = vld.sshfl [vmem:[#allocation1 + $0x8] sm:$0xff pattern:$0x73625140] }
  0x41   : > { %275 = vst [vmem:[#allocation1] ss:$4 sm:$0xff] %v273_v20  ;;  %v268_v23 = vsel %vm249_vm2, %v264_v21, 0.0  ;;  %v269_v24 = vsel %vm249_vm2, %v265_v22, 0.0 }
  0x42   : > { %v270_v25 = vadd.f32 %v269_v24, %v268_v23 }
  0x44   : > { %271 = vadd.xlane.f32.xlu1 %v270_v25 }
  0x48   : > { %v276_v27 = vld.sshfl [vmem:[#allocation1] sm:$0xff pattern:$0x73625140]  ;;  %v277_v28 = vld.sshfl [vmem:[#allocation1 + $0x8] sm:$0xff pattern:$0x73625140] }
  0x49   : > { %v280_v29 = vsel %vm249_vm2, %v276_v27, 0.0  ;;  %v281_v30 = vsel %vm249_vm2, %v277_v28, 0.0  ;;  %287 = vst [vmem:[#allocation1] ss:$4 sm:$0xff] %v285_v26 }
  0x4a   : > { %v282_v31 = vadd.f32 %v281_v30, %v280_v29 }
  0x4c   : > { %283 = vadd.xlane.f32.xlu0 %v282_v31 }
  0x50   : > { %v288_v32 = vld.sshfl [vmem:[#allocation1] sm:$0xff pattern:$0x73625140]  ;;  %v289_v33 = vld.sshfl [vmem:[#allocation1 + $0x8] sm:$0xff pattern:$0x73625140] }
  0x51   : > { %v292_v34 = vsel %vm249_vm2, %v288_v32, 0.0  ;;  %v293_v35 = vsel %vm249_vm2, %v289_v33, 0.0 }
  0x52   : > { %v294_v36 = vadd.f32 %v293_v35, %v292_v34 }
  0x54   : > { %295 = vadd.xlane.f32.xlu0 %v294_v36 }
  0xb7   : > { %v272_v38 = vpop.xlane.xlu1 %271 }
  0xbf   : > { %v284_v37 = vpop.xlane.xlu0 %283 }
  0xc7   : > { %v296_v39 = vpop.xlane.xlu0 %295 }
  0xc8   : > { %v298_v40 = vsub.f32 %v284_v37, %v296_v39  ;;  %v301_v41 = vsub.f32 %v272_v38, %v296_v39  ;;  %v297_v55 = vadd.f32 1.0, %v296_v39 }
  0xca   : > { %v299_v42 = vmul.f32 0.8, %v298_v40  ;;  %v302_v44 = vmul.f32 0.2, %v301_v41 }
  0xcc   : > { %v300_v43 = vadd.f32 %v299_v42, %v296_v39 }
  0xce   : > { %v303_v45 = vadd.f32 %v302_v44, %v300_v43 }
  0xd0   : > { %v304_v46 = vadd.f32 1.0, %v303_v45 }
  0xd2   : > { %547 = vrcp.f32 %v304_v46  ;;  %v316_v50 = vand.u32 2147483648, %v304_v46  ;;  %v314_v52 = vand.u32 2147483647, %v304_v46  ;;  %vm310_vm4 = vweird.f32 %v304_v46 }
  0xd3   : > { %549 = vrcp.f32 %v700_v60 }
  0xd4   : > { %v317_v54 = vor.u32 1.1754944e-38, %v316_v50  ;;  %vm315_vm6 = vcmp.eq.f32.partialorder %v314_v52, 8.507059e+37 }
  0xd8   : > { %v548_v47 = vpop.eup %547 }
  0xd9   : > { %v306_v48 = vmul.f32 %v548_v47, %v304_v46  ;;  %vm311_vm3 = vweird.f32 %v548_v47  ;;  %v550_v61 = vpop.eup %549 }
  0xda   : > { %vm312_vm5 = vmor %vm310_vm4, %vm311_vm3  ;;  %v332_v62 = vmul.f32 2.0, %v550_v61  ;;  %vm336_vm8 = vweird.f32 %v550_v61 }
  0xdb   : > { %v307_v49 = vsub.f32 1.0, %v306_v48 }
  0xdc   : > { %v333_v63 = vsub.f32 1.0, %v332_v62 }
  0xdd   : > { %v308_v51 = vmul.f32 %v548_v47, %v307_v49 }
  0xde   : > { %v334_v3 = vmul.f32 %v550_v61, %v333_v63 }
  0xdf   : > { %v309_v53 = vadd.f32 %v548_v47, %v308_v51 }
  0xe0   : > { %v335_v6 = vadd.f32 %v550_v61, %v334_v3 }
  0xe1   : > { %v313_v56 = vsel %vm312_vm5, %v548_v47, %v309_v53 }
  0xe2   : > { %v318_v57 = vsel %vm315_vm6, %v317_v54, %v313_v56  ;;  %v337_v9 = vsel %vm336_vm8, %v550_v61, %v335_v6 }
  0xe3   : > { %v319_v58 = vmul.f32 %v318_v57, %v297_v55 }
  0xe5   : > { %v321_v59 = vsel %vm320_vm7, %v319_v58, 0.0 }
  0xe6   : > { %322 = vadd.xlane.f32.xlu1 %v321_v59 }
 0x159   : > { %v323_v0 = vpop.xlane.xlu1 %322 }
 0x15a   : > { %v324_v1 = vrot.slane %v323_v0, 4 }
 0x15c   : > { %v325_v2 = vadd.f32 %v324_v1, %v323_v0 }
 0x15e   : > { %v326_v4 = vrot.slane %v325_v2, 2 }
 0x160   : > { %v327_v5 = vadd.f32 %v326_v4, %v325_v2 }
 0x162   : > { %v328_v7 = vrot.slane %v327_v5, 1 }
 0x164   : > { %v329_v8 = vadd.f32 %v328_v7, %v327_v5 }
 0x166   : > { %474 = vpush %v329_v8 }
 0x167   : > { %476 = vpush %v337_v9 }
 0x197   : > { %s475_s18 = spop %474 }
 0x198   : > { %s477_s26 = spop %476 }
 0x199   : > { %s339_s19 = smul.f32 %s477_s26, %s475_s18 }
 0x19b   : > { %v340_v10 = vstv %s339_s19 }
 0x19c   : > { %341 = vst [vmem:[%s219_s15] sm:$0x1] %v340_v10 }
 0x19d   : > { %638 = shalt.err (!%p635_p13)
}
 0x19e   : > { %482 = dma.vmem_to_hbm [thread:$0]  (%p767_p9), %s354_s16, 16, %s356_s20, %s343_s27  }
 0x19f PF: > { %s367_s29 = sand.u32 1, %s677_s9   ;;  %p492_p0 = pnand %p460_p12, %p774_p11 }
 0x1a0   : > { %s368_s6 = scalar_lea.sflag [#allocation7], %s367_s29 }
 0x1a1   : > { %p493_p1 = pneg %p492_p0 }
 0x1a3   : > { %672 = dma.done.wait (%p493_p1), %s368_s6, 16  }
 0x1a4   : > { %674 = vsyncadd (%p493_p1), %s368_s6, 4294967280  ;;  %s21_s14 = sadd.s32 1, %s697_s14   ;;  %s870_s9 = smov %s681_s10 }
 0x1a5   : > { %p18_p2 = scmp.ge.s32.totalorder %s21_s14, 4   ;;  %s871_s10 = smov %s685_s11 }
 0x1a6   : > { %s872_s11 = smov %s772_s23  ;;  %s873_s12 = smov %s693_s13 }
 0x1a7   : > { %s874_s13 = smov %s876_s17  ;;  %20 = sbr.rel (!%p18_p2) target bundleno = 8 (0x8), region = 94 }
 0x1ac   :  { %373 = vsyncpa [#allocation6], 1 }
 0x1ad   :  { %375 = vsyncpa [#allocation6 + $0x1], 1 }
 0x1ae   :  { %376 = vsyncpa [#allocation9], 1 }
 0x1af   :  { %378 = vsyncpa [#allocation9 + $0x1], 1 }
 0x1b0   :  { %379 = vsyncpa [#allocation7], 1 }
 0x1b1   :  { %381 = vsyncpa [#allocation7 + $0x1], 1 }

</bundles_post_ra>
